<compile_context>
chip_gen: v5e
topology: v5e:2x2
jax: 0.10.0
libtpu: 0.0.40
codegen_flags: <defaults>
</compile_context>

<pallas_src>
import functools

import jax
import jax.numpy as jnp
from jax.experimental import pallas as pl
from jax.experimental.pallas import tpu as pltpu


def _round_up(x, m):
    return ((x + m - 1) // m) * m


def _cdiv(a, b):
    return -(-a // b)


def swishglu_kernel(x_ref, w1_ref, w2_ref, b1_ref, b2_ref, o_ref):
    # x_ref: (tm, H) in the caller's dtype; cast to the MXU dtype in-kernel so
    # the wrapper never re-materializes x in HBM.
    x = x_ref[...].astype(w1_ref.dtype)
    # Two (tm, tn) f32 accumulators (identical MXU work to one fused dot, but
    # no non-lane-aligned split of a (tm, 2H) buffer).
    h1 = jnp.dot(x, w1_ref[...], preferred_element_type=jnp.float32) + b1_ref[...]
    h2 = jnp.dot(x, w2_ref[...], preferred_element_type=jnp.float32) + b2_ref[...]
    # Swish(h1) * h2 in f32 (sigmoid -> EUP slot, hidden under the MXU phase).
    o_ref[...] = (h1 * jax.nn.sigmoid(h1) * h2).astype(o_ref.dtype)


def prepare_swishglu_params(w1, b1, w2, b2, compute_dtype=jnp.bfloat16):
    """One-time conversion from PyTorch nn.Linear layout (W: [out, in]) to the
    kernel layout: transposed bf16 weights and f32 row-vector biases."""
    w1t = jnp.asarray(w1).T.astype(compute_dtype)                 # [H, H]
    w2t = jnp.asarray(w2).T.astype(compute_dtype)                 # [H, H]
    b1r = jnp.asarray(b1).reshape(1, -1).astype(jnp.float32)      # [1, H]
    b2r = jnp.asarray(b2).reshape(1, -1).astype(jnp.float32)      # [1, H]
    return w1t, w2t, b1r, b2r


def _vmem_cap_bytes():
    try:
        return int(0.9 * pltpu.get_tpu_info().vmem_capacity_bytes)
    except Exception:
        # Conservative fallback = v7x per-TensorCore VMEM (64 MiB).
        return int(0.9 * (64 << 20))


def _vmem_estimate_bytes(tm, tn, H, n_tiles, x_isz, o_isz, w_isz):
    w_bufs = 1 if n_tiles == 1 else 2          # resident -> single-buffered
    x_b = 2 * tm * H * x_isz                   # double-buffered x tiles
    w_b = w_bufs * 2 * H * tn * w_isz          # W1 + W2 column slabs
    b_b = w_bufs * 2 * _round_up(tn, 128) * 4  # biases
    o_b = 2 * tm * tn * o_isz                  # double-buffered out tiles
    tmp = 2 * tm * tn * 4                      # h1/h2 f32 intermediates
    return x_b + w_b + b_b + o_b + tmp


def swishglu_fused(x, w1t, w2t, b1, b2, *, tm=512, tn=None, out_dtype=None):
    """x: [..., H]; w1t/w2t: [H, H] (bf16); b1/b2: [1, H] (f32)."""
    orig_shape = x.shape
    H = orig_shape[-1]
    assert w1t.shape == (H, H) and w2t.shape == (H, H)
    assert b1.shape == (1, H) and b2.shape == (1, H)
    out_dtype = x.dtype if out_dtype is None else out_dtype

    x2d = x.reshape(-1, H)
    M = x2d.shape[0]

    x_isz = jnp.dtype(x.dtype).itemsize
    o_isz = jnp.dtype(out_dtype).itemsize
    w_isz = jnp.dtype(w1t.dtype).itemsize
    cap = _vmem_cap_bytes()

    # ---- tile sizing -----------------------------------------------------
    tm_eff = max(8, min(tm, _round_up(M, 8)))
    m_tiles = _cdiv(M, tm_eff)

    if tn is not None:
        tn_candidates = [tn]
    else:
        # Prefer resident weights (tn == H); stream 128-aligned slabs otherwise.
        tn_candidates = [H]
        if H % 128 == 0:
            for t in (1024, 512, 256, 128):
                if t < H and H % t == 0:
                    tn_candidates.append(t)
        # Small-M (decode-like): force >= 2 N tiles so both TensorCores get
        # work even when the M grid collapses to a single step.
        if m_tiles < 2 and H % 256 == 0:
            capped = [t for t in tn_candidates if t <= H // 2]
            tn_candidates = capped or tn_candidates

    tm_candidates = list(dict.fromkeys(t for t in (tm_eff, 256, 128) if t <= tm_eff))

    chosen = None
    for tm_c in tm_candidates:                  # shrink tn before tm
        for tn_c in tn_candidates:
            n_t = _cdiv(H, tn_c)
            if _vmem_estimate_bytes(tm_c, tn_c, H, n_t, x_isz, o_isz, w_isz) <= cap:
                chosen = (tm_c, tn_c)
                break
        if chosen is not None:
            break
    if chosen is None:
        # TODO(synk): for extreme H also stream the contraction (K) dimension.
        chosen = (tm_candidates[-1], tn_candidates[-1])
    tm_eff, tn_eff = chosen

    m_tiles = _cdiv(M, tm_eff)
    n_tiles = _cdiv(H, tn_eff)
    grid = (n_tiles, m_tiles)   # M innermost: x streams fastest, weights slow

    resident = n_tiles == 1

    def _spec(shape, imap, single_buffer):
        if single_buffer:
            return pl.BlockSpec(shape, imap, pipeline_mode=pl.Buffered(1))
        return pl.BlockSpec(shape, imap)

    est = _vmem_estimate_bytes(tm_eff, tn_eff, H, n_tiles, x_isz, o_isz, w_isz)
    vmem_limit = int(min(cap, max(32 << 20, int(est * 1.25) + (4 << 20))))

    out = pl.pallas_call(
        swishglu_kernel,
        out_shape=jax.ShapeDtypeStruct((M, H), out_dtype),
        grid_spec=pltpu.PrefetchScalarGridSpec(
            num_scalar_prefetch=0,
            grid=grid,
            in_specs=[
                # x rows: streamed along M, original dtype (cast in-kernel).
                pl.BlockSpec((tm_eff, H), lambda j, i: (i, 0)),
                # Weight column slabs: resident (single-buffered) when they
                # fit, otherwise streamed along the N axis (double-buffered).
                _spec((H, tn_eff), lambda j, i: (0, j), resident),
                _spec((H, tn_eff), lambda j, i: (0, j), resident),
                # Bias column slabs.
                _spec((1, tn_eff), lambda j, i: (0, j), resident),
                _spec((1, tn_eff), lambda j, i: (0, j), resident),
            ],
            out_specs=pl.BlockSpec((tm_eff, tn_eff), lambda j, i: (i, j)),
        ),
        compiler_params=pltpu.CompilerParams(
            # Blocks are fully independent: both grid axes shard across
            # TensorCores (N gives megacore work even when M is one tile).
            dimension_semantics=("parallel", "parallel"),
            vmem_limit_bytes=vmem_limit,
        ),
    )(x2d, w1t, w2t, b1, b2)

    return out.reshape(orig_shape[:-1] + (H,)).astype(out_dtype)


def swishglu(x, w1, b1, w2, b2, *, tm=512, tn=None, out_dtype=None):
    """Convenience wrapper taking PyTorch-layout parameters (W: [out, in])."""
    w1t, w2t, b1r, b2r = prepare_swishglu_params(w1, b1, w2, b2)
    return swishglu_fused(x, w1t, w2t, b1r, b2r, tm=tm, tn=tn, out_dtype=out_dtype)


def swishglu_ref(x, w1, b1, w2, b2):
    h1 = jnp.einsum("...i,oi->...o", x, w1) + b1
    h2 = jnp.einsum("...i,oi->...o", x, w2) + b2
    return h1 * jax.nn.sigmoid(h1) * h2


if __name__ == "__main__":
    key = jax.random.PRNGKey(0)
    batch, seq, hidden = 2, 8, 32

    kx, kw1, kb1, kw2, kb2 = jax.random.split(key, 5)
    x = jax.random.normal(kx, (batch, seq, hidden), dtype=jnp.float32)

    # Deterministic parameter init (uniform like nn.Linear default).
    bound = 1.0 / (hidden ** 0.5)
    w1 = jax.random.uniform(kw1, (hidden, hidden), jnp.float32, -bound, bound)
    b1 = jax.random.uniform(kb1, (hidden,), jnp.float32, -bound, bound)
    w2 = jax.random.uniform(kw2, (hidden, hidden), jnp.float32, -bound, bound)
    b2 = jax.random.uniform(kb2, (hidden,), jnp.float32, -bound, bound)

    # Pack weights once (hoists the transpose/cast out of the per-call path).
    w1t, w2t, b1r, b2r = prepare_swishglu_params(w1, b1, w2, b2)

    y = swishglu_fused(x, w1t, w2t, b1r, b2r)
    y = jax.block_until_ready(y)

    y_ref = swishglu_ref(x, w1, b1, w2, b2)
    assert y.shape == x.shape
    # bf16 matmul operands with f32 accumulation -> relaxed tolerance.
    assert jnp.allclose(y, y_ref, atol=3e-2, rtol=3e-2), "mismatch vs reference"

    print("KERNEL_OK")
</pallas_src>

<mosaic_0001>
module attributes {stable_mosaic.version = 11 : i64} {
  func.func @swishglu_kernel(%arg0: i32, %arg1: i32, %arg2: memref<16x32xf32, #tpu.memory_space<vmem>>, %arg3: memref<32x32xbf16, #tpu.memory_space<vmem>>, %arg4: memref<32x32xbf16, #tpu.memory_space<vmem>>, %arg5: memref<1x32xf32, #tpu.memory_space<vmem>>, %arg6: memref<1x32xf32, #tpu.memory_space<vmem>>, %arg7: memref<16x32xf32, #tpu.memory_space<vmem>>) attributes {dimension_semantics = [#tpu.dimension_semantics<parallel>, #tpu.dimension_semantics<parallel>], iteration_bounds = array<i64: 1, 1>, scalar_prefetch = 0 : i64, scratch_operands = 0 : i64, tpu.core_type = #tpu.core_type<tc>, window_params = [{transform_indices = @transform_0, window_bounds = array<i64: 16, 32>}, {pipeline_mode = #tpu.pipeline_mode<synchronous>, transform_indices = @transform_1, window_bounds = array<i64: 32, 32>}, {pipeline_mode = #tpu.pipeline_mode<synchronous>, transform_indices = @transform_2, window_bounds = array<i64: 32, 32>}, {pipeline_mode = #tpu.pipeline_mode<synchronous>, transform_indices = @transform_3, window_bounds = array<i64: 1, 32>}, {pipeline_mode = #tpu.pipeline_mode<synchronous>, transform_indices = @transform_4, window_bounds = array<i64: 1, 32>}, {transform_indices = @transform_5, window_bounds = array<i64: 16, 32>}]} {
    %c0 = arith.constant 0 : index
    %c0_0 = arith.constant 0 : index
    %0 = vector.load %arg2[%c0, %c0_0] : memref<16x32xf32, #tpu.memory_space<vmem>>, vector<16x32xf32>
    %1 = arith.truncf %0 : vector<16x32xf32> to vector<16x32xbf16>
    %c0_1 = arith.constant 0 : index
    %c0_2 = arith.constant 0 : index
    %2 = vector.load %arg3[%c0_1, %c0_2] : memref<32x32xbf16, #tpu.memory_space<vmem>>, vector<32x32xbf16>
    %cst = arith.constant dense<0.000000e+00> : vector<16x32xf32>
    %3 = tpu.matmul %1, %2, %cst {dimension_numbers = #tpu.dot_dimension_numbers<[1], [0], [0], [1], [0, 0, 1, 1], [], []>} : vector<16x32xbf16>, vector<32x32xbf16>, vector<16x32xf32> -> vector<16x32xf32>
    %c0_3 = arith.constant 0 : index
    %c0_4 = arith.constant 0 : index
    %4 = vector.load %arg5[%c0_3, %c0_4] : memref<1x32xf32, #tpu.memory_space<vmem>>, vector<1x32xf32>
    %5 = vector.broadcast %4 : vector<1x32xf32> to vector<16x32xf32>
    %6 = arith.addf %3, %5 : vector<16x32xf32>
    %c0_5 = arith.constant 0 : index
    %c0_6 = arith.constant 0 : index
    %7 = vector.load %arg4[%c0_5, %c0_6] : memref<32x32xbf16, #tpu.memory_space<vmem>>, vector<32x32xbf16>
    %cst_7 = arith.constant dense<0.000000e+00> : vector<16x32xf32>
    %8 = tpu.matmul %1, %7, %cst_7 {dimension_numbers = #tpu.dot_dimension_numbers<[1], [0], [0], [1], [0, 0, 1, 1], [], []>} : vector<16x32xbf16>, vector<32x32xbf16>, vector<16x32xf32> -> vector<16x32xf32>
    %c0_8 = arith.constant 0 : index
    %c0_9 = arith.constant 0 : index
    %9 = vector.load %arg6[%c0_8, %c0_9] : memref<1x32xf32, #tpu.memory_space<vmem>>, vector<1x32xf32>
    %10 = vector.broadcast %9 : vector<1x32xf32> to vector<16x32xf32>
    %11 = arith.addf %8, %10 : vector<16x32xf32>
    %12 = arith.negf %6 : vector<16x32xf32>
    %13 = math.exp %12 : vector<16x32xf32>
    %cst_10 = arith.constant 1.000000e+00 : f32
    %14 = vector.broadcast %cst_10 : f32 to vector<16x32xf32>
    %15 = arith.addf %14, %13 : vector<16x32xf32>
    %16 = arith.divf %14, %15 : vector<16x32xf32>
    %17 = arith.mulf %6, %16 : vector<16x32xf32>
    %18 = arith.mulf %17, %11 : vector<16x32xf32>
    %c0_11 = arith.constant 0 : index
    %c0_12 = arith.constant 0 : index
    %19 = vector.load %arg7[%c0_11, %c0_12] : memref<16x32xf32, #tpu.memory_space<vmem>>, vector<16x32xf32>
    tpu.vector_store %arg7[%c0_11, %c0_12], %18 {strides = array<i32>} : memref<16x32xf32, #tpu.memory_space<vmem>>, vector<16x32xf32>,
    return
  }
  func.func @transform_0(%arg0: i32, %arg1: i32) -> (i32, i32) {
    %c0_i32 = arith.constant 0 : i32
    %c0_i32_0 = arith.constant 0 : i32
    return %arg1, %c0_i32 : i32, i32
  }
  func.func @transform_1(%arg0: i32, %arg1: i32) -> (i32, i32) {
    %c0_i32 = arith.constant 0 : i32
    %c0_i32_0 = arith.constant 0 : i32
    return %c0_i32, %arg0 : i32, i32
  }
  func.func @transform_2(%arg0: i32, %arg1: i32) -> (i32, i32) {
    %c0_i32 = arith.constant 0 : i32
    %c0_i32_0 = arith.constant 0 : i32
    return %c0_i32, %arg0 : i32, i32
  }
  func.func @transform_3(%arg0: i32, %arg1: i32) -> (i32, i32) {
    %c0_i32 = arith.constant 0 : i32
    %c0_i32_0 = arith.constant 0 : i32
    return %c0_i32, %arg0 : i32, i32
  }
  func.func @transform_4(%arg0: i32, %arg1: i32) -> (i32, i32) {
    %c0_i32 = arith.constant 0 : i32
    %c0_i32_0 = arith.constant 0 : i32
    return %c0_i32, %arg0 : i32, i32
  }
  func.func @transform_5(%arg0: i32, %arg1: i32) -> (i32, i32) {
    %c0_i32 = arith.constant 0 : i32
    return %arg1, %arg0 : i32, i32
  }
}

</mosaic_0001>

<bundles_post_ra>
// kernel: tpu_custom_call.1
= control target key start
LH: loop header
LB: loop body
LE: loop exit
PB: predicated region body
PF: predicated region fallthrough
CT: control target
= control target key end

     0   :  { %10 = vsyncpa [#allocation3], 0  ;;  %s418_s0 = inlined_call_operand.hbm [shape: f32[16,32], index: 0, kind: input, shape index: {}]   ;;  %s419_s1 = inlined_call_operand.hbm [shape: bf16[32,32], index: 1, kind: input, shape index: {}]   ;;  %s420_s2 = inlined_call_operand.hbm [shape: bf16[32,32], index: 2, kind: input, shape index: {}]   ;;  %s421_s3 = inlined_call_operand.vmem [shape: f32[1,32], index: 3, kind: input, shape index: {}]   ;;  %s422_s4 = inlined_call_operand.vmem [shape: f32[1,32], index: 4, kind: input, shape index: {}]   ;;  %s423_s5 = inlined_call_operand.hbm [shape: f32[16,32], index: 5, kind: output, shape index: {}]  }
   0x1   :  { %11 = vsyncpa [#allocation6], 0  ;;  %s30_s20 = sshll.u32 %s419_s1, 4  ;;  %s31_s20 = int_to_ptr.hbm [resolvable:$true] %s30_s20 }
   0x2   :  { %12 = vsyncpa [#allocation4], 0  ;;  %s352_s21 = smov [#allocation5]   ;;  %s17_s25 = sshll.u32 %s418_s0, 4  ;;  %s18_s25 = int_to_ptr.hbm [resolvable:$true] %s17_s25 }
   0x3   :  { %s32_s22 = sshll.u32 %s352_s21, 4  ;;  %s353_s26 = smov 64   ;;  %s33_s22 = int_to_ptr.vmem [resolvable:$true] %s32_s22 }
   0x4   :  { %s354_s27 = smov 4   ;;  %s355_s28 = smov [#allocation2]  }
   0x5   :  { %38 = dma.hbm_to_vmem [thread:$0]  %s31_s20, 256, %s33_s22, [#allocation6], %s353_s26, %s353_s26, %s354_s27  }
   0x6   :  { %s19_s29 = sshll.u32 %s355_s28, 4  ;;  %s356_s30 = smov 128   ;;  %s20_s29 = int_to_ptr.vmem [resolvable:$true] %s19_s29 }
   0x7   :  { %s357_s6 = smov 8   ;;  %s43_s8 = sshll.u32 %s420_s2, 4  ;;  %s44_s8 = int_to_ptr.hbm [resolvable:$true] %s43_s8 }
   0x8   :  { %25 = dma.hbm_to_vmem [thread:$0]  %s18_s25, 256, %s20_s29, [#allocation3], %s356_s30, %s356_s30, %s357_s6  }
   0x9   :  { %s358_s9 = smov [#allocation7]  }
   0xa   :  { %s45_s0 = sshll.u32 %s358_s9, 4  ;;  %s46_s0 = int_to_ptr.vmem [resolvable:$true] %s45_s0 }
   0xb   :  { %51 = dma.hbm_to_vmem [thread:$0]  %s44_s8, 256, %s46_s0, [#allocation6], %s353_s26, %s353_s26, %s354_s27  }
   0xc   :  { %346 = dma.done.wait [#allocation3], 256  }
   0xd   :  { %347 = vsyncadd [#allocation3], 4294967040 }
   0xe   :  { %348 = dma.done.wait [#allocation6], 512  }
   0xf   :  { %349 = vsyncadd [#allocation6], 4294966784  ;;  %v229_v0 = vld [vmem:[#allocation5 + $0x8] sm:$0xff]  ;;  %v228_v1 = vld [vmem:[#allocation5] sm:$0xff]  ;;  %vm92_vm0 = vcmask 261120   ;;  %s194_s15 = sshll.u32 %s423_s5, 4  ;;  %s195_s15 = int_to_ptr.hbm [resolvable:$true] %s194_s15 }
  0x10   :  { %v69_v2 = vld [vmem:[#allocation2] sm:$0xff]  ;;  %v231_v3 = vld [vmem:[#allocation7 + $0x8] sm:$0xff]  ;;  %102 = vmatpush.bf16.msra.mxu0 %v229_v0 }
  0x11   :  { %v70_v4 = vld [vmem:[#allocation2 + $0x8] sm:$0xff]  ;;  %136 = vmatpush.bf16.msra.mxu1 %v231_v3  ;;  %v230_v5 = vld [vmem:[#allocation7] sm:$0xff] }
  0x12   :  { %v71_v6 = vpack.c.bf16 %v70_v4, %v69_v2  ;;  %v240_v7 = vld [vmem:[%s421_s3] ss:$0 sm:$0xff] }
  0x13   :  { %v241_v24 = vld [vmem:[%s422_s4] ss:$0 sm:$0xff]  ;;  %s359_s4 = smov [#allocation8]  }
  0x14   :  { %103 = vmatpush.bf16.msra.mxu0 %v228_v1  ;;  %s192_s12 = sshll.u32 %s359_s4, 4  ;;  %s193_s12 = int_to_ptr.vmem [resolvable:$true] %s192_s12 }
  0x15   :  { %137 = vmatpush.bf16.msra.mxu1 %v230_v5 }
  0x17   :  { %216 = vmatmul.msk.bf16.vlgmr.msra.gmra.mxu0 %vm92_vm0, %v71_v6 }
  0x18   :  { %225 = vmatmul.msk.bf16.vlgmr.msra.gmra.mxu1 %vm92_vm0, %v71_v6 }
  0x94   :  { %v105_v8 = vpop.f32.mrf.mxu0 }
  0x95   :  { %v106_v9 = vadd.f32 %v240_v7, %v105_v8  ;;  %v139_v25 = vpop.f32.mrf.mxu1 }
  0x96   :  { %v140_v31 = vadd.f32 %v241_v24, %v139_v25 }
  0x97   :  { %v226_v10 = vmul.f32 -1.442695, %v106_v9 }
  0x99   :  { %242 = vpow2.f32 %v226_v10 }
  0x9c   :  { %v107_v11 = vpop.f32.mrf.mxu0 }
  0x9d   :  { %v108_v12 = vadd.f32 %v240_v7, %v107_v11  ;;  %v141_v41 = vpop.f32.mrf.mxu1 }
  0x9e   :  { %v142_v45 = vadd.f32 %v241_v24, %v141_v41 }
  0x9f   :  { %v243_v13 = vpop.eup %242  ;;  %v227_v14 = vmul.f32 -1.442695, %v108_v12 }
  0xa0   :  { %v150_v15 = vadd.f32 1.0, %v243_v13 }
  0xa1   :  { %244 = vpow2.f32 %v227_v14 }
  0xa2   :  { %246 = vrcp.f32 %v150_v15  ;;  %v163_v21 = vand.u32 2147483648, %v150_v15  ;;  %v161_v23 = vand.u32 2147483647, %v150_v15  ;;  %vm157_vm2 = vweird.f32 %v150_v15 }
  0xa4   :  { %v164_v28 = vor.u32 1.1754944e-38, %v163_v21  ;;  %vm162_vm4 = vcmp.eq.f32.partialorder %v161_v23, 8.507059e+37 }
  0xa7   :  { %v245_v16 = vpop.eup %244 }
  0xa8   :  { %v247_v17 = vpop.eup %246  ;;  %v151_v18 = vadd.f32 1.0, %v245_v16 }
  0xa9   :  { %v153_v19 = vmul.f32 %v247_v17, %v150_v15  ;;  %vm158_vm1 = vweird.f32 %v247_v17 }
  0xaa   :  { %248 = vrcp.f32 %v151_v18  ;;  %vm159_vm3 = vmor %vm157_vm2, %vm158_vm1  ;;  %v178_v35 = vand.u32 2147483648, %v151_v18  ;;  %v176_v37 = vand.u32 2147483647, %v151_v18  ;;  %vm172_vm6 = vweird.f32 %v151_v18 }
  0xab   :  { %v154_v20 = vsub.f32 1.0, %v153_v19 }
  0xac   :  { %v179_v40 = vor.u32 1.1754944e-38, %v178_v35  ;;  %vm177_vm8 = vcmp.eq.f32.partialorder %v176_v37, 8.507059e+37 }
  0xad   :  { %v155_v22 = vmul.f32 %v247_v17, %v154_v20 }
  0xaf   :  { %v156_v26 = vadd.f32 %v247_v17, %v155_v22 }
  0xb0   :  { %v249_v27 = vpop.eup %248 }
  0xb1   :  { %v160_v29 = vsel %vm159_vm3, %v247_v17, %v156_v26  ;;  %v168_v30 = vmul.f32 %v249_v27, %v151_v18  ;;  %vm173_vm5 = vweird.f32 %v249_v27 }
  0xb2   :  { %v165_v32 = vsel %vm162_vm4, %v164_v28, %v160_v29  ;;  %vm174_vm7 = vmor %vm172_vm6, %vm173_vm5 }
  0xb3   :  { %v182_v33 = vmul.f32 %v165_v32, %v106_v9  ;;  %v169_v34 = vsub.f32 1.0, %v168_v30 }
  0xb5   :  { %v170_v36 = vmul.f32 %v249_v27, %v169_v34  ;;  %v184_v38 = vmul.f32 %v182_v33, %v140_v31 }
  0xb7   :  { %v171_v39 = vadd.f32 %v249_v27, %v170_v36  ;;  %186 = vst.msk [vmem:[#allocation8] sm:$0xff] %vm92_vm0, %v184_v38 }
  0xb9   :  { %v175_v42 = vsel %vm174_vm7, %v249_v27, %v171_v39 }
  0xba   :  { %v180_v43 = vsel %vm177_vm8, %v179_v40, %v175_v42 }
  0xbb   :  { %v183_v44 = vmul.f32 %v180_v43, %v108_v12 }
  0xbd   :  { %v185_v46 = vmul.f32 %v183_v44, %v142_v45 }
  0xbf   :  { %187 = vst.msk [vmem:[#allocation8 + $0x8] sm:$0xff] %vm92_vm0, %v185_v46 }
  0xc0   :  { %200 = dma.vmem_to_hbm [thread:$0]  %s193_s12, 256, %s195_s15, [#allocation4], %s356_s30, %s356_s30, %s357_s6  }
  0xc1   :  { %350 = dma.done.wait [#allocation4], 256  }
  0xc2   :  { %351 = vsyncadd [#allocation4], 4294967040 }
  0xc3   :  { %205 = vsyncpa [#allocation3], 1 }
  0xc4   :  { %206 = vsyncpa [#allocation6], 1 }
  0xc5   :  { %207 = vsyncpa [#allocation4], 1 }

</bundles_post_ra>
